<compile_context>
chip_gen: v7x
topology: tpu7x:2x2x1
jax: 0.10.0
libtpu: 0.0.40
codegen_flags: <defaults>
</compile_context>

<pallas_src>
import functools

import jax
import jax.numpy as jnp
from jax.experimental import pallas as pl
from jax.experimental.pallas import tpu as pltpu


def adapter_moe_kernel(x_ref, rt_ref, wt_ref, r_ref, b_ref, o_ref, *, mxu_dtype):
    # x_ref  : (TB, K, D)  batch-tile slab
    # rt_ref : (2, K, D)   router stacked by expert (rt[i] == router[:, i, :])
    # wt_ref : (D, D)      weight.T, already cast to mxu_dtype in the wrapper
    # r_ref  : (K, D)      adapter scaling
    # b_ref  : (1, D)      bias
    # o_ref  : (TB, K, D)  output
    x = x_ref[...].astype(jnp.float32)               # f32 element-wise path (v5e: no bf16 VPU/EUP)
    TB, K, D = x.shape

    # ---- Router logits: two multiply+reduce passes; no (2,TB,K,D) broadcast. ----
    r0 = rt_ref[0].astype(jnp.float32)               # (K, D)
    r1 = rt_ref[1].astype(jnp.float32)
    l0 = jnp.sum(x * r0[jnp.newaxis], axis=-1, keepdims=True)   # (TB, K, 1)
    l1 = jnp.sum(x * r1[jnp.newaxis], axis=-1, keepdims=True)

    # ---- 2-way softmax (numerically stable); exp + exact recip on the EUP. ----
    m = jnp.maximum(l0, l1)
    e0 = jnp.exp(l0 - m)
    e1 = jnp.exp(l1 - m)
    inv_den = pl.reciprocal(e0 + e1)                 # exact: p0 + p1 == 1
    p0 = e0 * inv_den
    p1 = e1 * inv_den

    # ---- Linear branch: tall MXU matmul, contract LHS-last with RHS-first. ----
    # wt is pre-cast + pre-transposed in the wrapper; only x needs an in-kernel cast.
    out = jnp.dot(x.reshape(TB * K, D).astype(mxu_dtype), wt_ref[...],
                  preferred_element_type=jnp.float32).reshape(TB, K, D)

    # ---- Blend into a single live result slab (adapter branch fused in). ----
    r_mat = r_ref[...].astype(jnp.float32)           # (K, D)
    bias = b_ref[...].astype(jnp.float32)            # (1, D)
    out = out * p1
    out = out + (x * r_mat[jnp.newaxis] + bias[jnp.newaxis]) * p0
    o_ref[...] = out.astype(o_ref.dtype)


def _choose_block_b(B, K, D, *, target_bytes=2 << 20):
    """Batch elements folded per grid step.

    At moderate D the kernel is HBM-bandwidth bound (arithmetic intensity
    ~D/4 FLOP/byte), so the slab is sized purely for DMA amortization:
    ~2 MiB of f32 x per step keeps the ~0.35 us per-step grid overhead well
    under 10%.  We also keep at least 2 grid steps when B > 1 so the
    "parallel" batch axis can be split across v7x's two TensorCores.
    """
    row_bytes = K * D * 4
    tb = max(1, target_bytes // row_bytes)
    if B > 1:
        tb = min(tb, (B + 1) // 2)      # keep grid_b >= 2 (megacore / v7x)
    return int(min(tb, B))


def _vmem_limit_bytes(block_b, K, D, out_itemsize, weight_itemsize):
    """VMEM budget: double-buffered x/out slabs + single-buffered residents
    + headroom for the in-kernel f32 temporaries."""
    slab_in = block_b * K * D * 4
    slab_out = block_b * K * D * out_itemsize
    residents = 2 * K * D * 4 + D * D * weight_itemsize + K * D * 4 + D * 4
    est = 2 * slab_in + 2 * slab_out + residents + 3 * slab_in
    return int(min(max(2 * est, 32 << 20), 64 << 20))


def adapter_moe_forward(x, router, weight, r, bias, *, block_b=None,
                        mxu_dtype=jnp.bfloat16, out_dtype=None):
    """x: (B, K, D); router: (K, 2, D); weight: (D, D); r: (K, D); bias: (D,).

    mxu_dtype=jnp.float32 gives bit-closer parity with the f32 reference;
    out_dtype=jnp.bfloat16 halves output HBM traffic if the consumer allows it.
    """
    B, K, D = x.shape
    assert router.shape == (K, 2, D)
    assert weight.shape == (D, D)
    assert r.shape == (K, D) and bias.shape == (D,)
    out_dtype = x.dtype if out_dtype is None else out_dtype

    if block_b is None:
        block_b = _choose_block_b(B, K, D)
    grid_b = pl.cdiv(B, block_b)
    b_pad = grid_b * block_b
    if b_pad != B:
        # Zero-pad awkward batch sizes (numerically safe: softmax(0,0)=0.5,
        # no NaNs); padded rows are sliced off below.
        x = jnp.pad(x, ((0, b_pad - B), (0, 0), (0, 0)))

    # One-time wrapper transforms (amortized over the whole batch):
    #   * router stacked by expert -> (2, K, D)
    #   * weight cast to the MXU dtype ONCE and pre-transposed so the kernel
    #     never re-casts or transposes it per grid step.
    rt = jnp.transpose(router, (1, 0, 2))          # (2, K, D)
    wt = weight.T.astype(mxu_dtype)                # (D_in, D_out)
    b2 = bias.reshape(1, D)

    kernel = functools.partial(adapter_moe_kernel, mxu_dtype=mxu_dtype)

    def resident(shape):
        # Constant index_map -> fetched once; single-buffered to halve the
        # resident VMEM footprint (matters on v7x's 64 MiB/TC at large D).
        return pl.BlockSpec(shape, lambda b: (0,) * len(shape),
                            pipeline_mode=pl.Buffered(1))

    out = pl.pallas_call(
        kernel,
        out_shape=jax.ShapeDtypeStruct((b_pad, K, D), out_dtype),
        grid_spec=pltpu.PrefetchScalarGridSpec(
            num_scalar_prefetch=0,
            grid=(grid_b,),
            in_specs=[
                pl.BlockSpec((block_b, K, D), lambda b: (b, 0, 0)),  # x slab
                resident((2, K, D)),                                 # router
                resident((D, D)),                                    # weight.T (bf16)
                resident((K, D)),                                    # r
                resident((1, D)),                                    # bias
            ],
            out_specs=pl.BlockSpec((block_b, K, D), lambda b: (b, 0, 0)),
        ),
        compiler_params=pltpu.CompilerParams(
            dimension_semantics=("parallel",),     # megacore / v7x 2-TC split
            vmem_limit_bytes=_vmem_limit_bytes(
                block_b, K, D,
                jnp.dtype(out_dtype).itemsize, jnp.dtype(mxu_dtype).itemsize),
        ),
    )(x, rt, wt, r, b2)

    return out[:B] if b_pad != B else out


def reference_forward(x, router, weight, r, bias):
    logits = jnp.einsum("bkd,kid->bki", x, router)
    prob = jax.nn.softmax(logits, axis=-1)
    x_adapter = x * r + bias
    x_linear = x @ weight.T
    return x_adapter * prob[:, :, 0:1] + x_linear * prob[:, :, 1:2]


if __name__ == "__main__":
    # Module config: in_features == out_features == D (router path),
    # bias=True, ensemble_bias=False, scaling_init='random-signs'.
    B, K, D = 4, 8, 128
    key = jax.random.PRNGKey(0)
    k_x, k_rt, k_w, k_r, k_b, k_x2 = jax.random.split(key, 6)

    d_rsqrt = D ** -0.5
    x = jax.random.normal(k_x, (B, K, D), dtype=jnp.float32)
    router = jax.random.uniform(k_rt, (K, 2, D), minval=-d_rsqrt, maxval=d_rsqrt,
                                dtype=jnp.float32)
    weight = jax.random.uniform(k_w, (D, D), minval=-d_rsqrt, maxval=d_rsqrt,
                                dtype=jnp.float32)
    # scaling_init = 'random-signs': r in {-1, +1}
    r = (jax.random.bernoulli(k_r, 0.5, (K, D)).astype(jnp.float32) * 2.0 - 1.0)
    bias = jax.random.uniform(k_b, (D,), minval=-d_rsqrt, maxval=d_rsqrt,
                              dtype=jnp.float32)

    ref = reference_forward(x, router, weight, r, bias)

    # Default path: bf16 MXU operands, auto tiling (block_b=2 here -> 2 grid
    # steps, exercising the multi-step index_map and megacore split).
    out = jax.block_until_ready(adapter_moe_forward(x, router, weight, r, bias))
    assert out.shape == (B, K, D) and out.dtype == x.dtype
    assert jnp.allclose(out, ref, atol=2e-2, rtol=2e-2), (
        f"max abs err {jnp.max(jnp.abs(out - ref))}")

    # Full-f32 MXU path (closer parity with the f32 reference).
    out_f32 = jax.block_until_ready(
        adapter_moe_forward(x, router, weight, r, bias, mxu_dtype=jnp.float32))
    assert jnp.allclose(out_f32, ref, atol=2e-2, rtol=2e-2), (
        f"max abs err {jnp.max(jnp.abs(out_f32 - ref))}")

    # Awkward batch (B=5): exercises the zero-pad + slice path and auto tiling
    # that does not require block_b to divide B.
    B2 = 5
    x2 = jax.random.normal(k_x2, (B2, K, D), dtype=jnp.float32)
    ref2 = reference_forward(x2, router, weight, r, bias)
    out2 = jax.block_until_ready(adapter_moe_forward(x2, router, weight, r, bias))
    assert out2.shape == (B2, K, D)
    assert jnp.allclose(out2, ref2, atol=2e-2, rtol=2e-2), (
        f"max abs err {jnp.max(jnp.abs(out2 - ref2))}")

    print("KERNEL_OK")
</pallas_src>

<mosaic_0001>
module attributes {stable_mosaic.version = 11 : i64} {
  func.func @adapter_moe_kernel(%arg0: i32, %arg1: memref<2x8x128xf32, #tpu.memory_space<vmem>>, %arg2: memref<2x8x128xf32, #tpu.memory_space<vmem>>, %arg3: memref<128x128xbf16, #tpu.memory_space<vmem>>, %arg4: memref<8x128xf32, #tpu.memory_space<vmem>>, %arg5: memref<1x128xf32, #tpu.memory_space<vmem>>, %arg6: memref<2x8x128xf32, #tpu.memory_space<vmem>>) attributes {dimension_semantics = [#tpu.dimension_semantics<parallel>], iteration_bounds = array<i64: 2>, scalar_prefetch = 0 : i64, scratch_operands = 0 : i64, tpu.core_type = #tpu.core_type<tc>, window_params = [{transform_indices = @transform_0, window_bounds = array<i64: 2, 8, 128>}, {pipeline_mode = #tpu.pipeline_mode<synchronous>, transform_indices = @transform_1, window_bounds = array<i64: 2, 8, 128>}, {pipeline_mode = #tpu.pipeline_mode<synchronous>, transform_indices = @transform_2, window_bounds = array<i64: 128, 128>}, {pipeline_mode = #tpu.pipeline_mode<synchronous>, transform_indices = @transform_3, window_bounds = array<i64: 8, 128>}, {pipeline_mode = #tpu.pipeline_mode<synchronous>, transform_indices = @transform_4, window_bounds = array<i64: 1, 128>}, {transform_indices = @transform_5, window_bounds = array<i64: 2, 8, 128>}]} {
    %c0 = arith.constant 0 : index
    %c0_0 = arith.constant 0 : index
    %c0_1 = arith.constant 0 : index
    %0 = vector.load %arg1[%c0, %c0_0, %c0_1] : memref<2x8x128xf32, #tpu.memory_space<vmem>>, vector<2x8x128xf32>
    %c0_2 = arith.constant 0 : index
    %c0_3 = arith.constant 0 : index
    %c0_4 = arith.constant 0 : index
    %1 = vector.load %arg2[%c0_2, %c0_3, %c0_4] : memref<2x8x128xf32, #tpu.memory_space<vmem>>, vector<1x8x128xf32>
    %2 = vector.shape_cast %1 : vector<1x8x128xf32> to vector<8x128xf32>
    %c1 = arith.constant 1 : index
    %c0_5 = arith.constant 0 : index
    %c0_6 = arith.constant 0 : index
    %3 = vector.load %arg2[%c1, %c0_5, %c0_6] : memref<2x8x128xf32, #tpu.memory_space<vmem>>, vector<1x8x128xf32>
    %4 = vector.shape_cast %3 : vector<1x8x128xf32> to vector<8x128xf32>
    %5 = vector.shape_cast %2 : vector<8x128xf32> to vector<1x8x128xf32>
    %6 = vector.broadcast %5 : vector<1x8x128xf32> to vector<2x8x128xf32>
    %7 = arith.mulf %0, %6 : vector<2x8x128xf32>
    %cst = arith.constant dense<0.000000e+00> : vector<2x8xf32>
    %8 = vector.multi_reduction <add>, %7, %cst [2] : vector<2x8x128xf32> to vector<2x8xf32>
    %9 = vector.shape_cast %8 : vector<2x8xf32> to vector<2x8x1xf32>
    %10 = vector.shape_cast %4 : vector<8x128xf32> to vector<1x8x128xf32>
    %11 = vector.broadcast %10 : vector<1x8x128xf32> to vector<2x8x128xf32>
    %12 = arith.mulf %0, %11 : vector<2x8x128xf32>
    %cst_7 = arith.constant dense<0.000000e+00> : vector<2x8xf32>
    %13 = vector.multi_reduction <add>, %12, %cst_7 [2] : vector<2x8x128xf32> to vector<2x8xf32>
    %14 = vector.shape_cast %13 : vector<2x8xf32> to vector<2x8x1xf32>
    %15 = arith.maximumf %9, %14 : vector<2x8x1xf32>
    %16 = arith.subf %9, %15 : vector<2x8x1xf32>
    %17 = math.exp %16 : vector<2x8x1xf32>
    %18 = arith.subf %14, %15 : vector<2x8x1xf32>
    %19 = math.exp %18 : vector<2x8x1xf32>
    %20 = arith.addf %17, %19 : vector<2x8x1xf32>
    %21 = tpu.reciprocal %20 : vector<2x8x1xf32> -> vector<2x8x1xf32>
    %22 = arith.mulf %17, %21 : vector<2x8x1xf32>
    %23 = arith.mulf %19, %21 : vector<2x8x1xf32>
    %24 = vector.shape_cast %0 : vector<2x8x128xf32> to vector<16x128xf32>
    %25 = arith.truncf %24 : vector<16x128xf32> to vector<16x128xbf16>
    %c0_8 = arith.constant 0 : index
    %c0_9 = arith.constant 0 : index
    %26 = vector.load %arg3[%c0_8, %c0_9] : memref<128x128xbf16, #tpu.memory_space<vmem>>, vector<128x128xbf16>
    %cst_10 = arith.constant dense<0.000000e+00> : vector<16x128xf32>
    %27 = tpu.matmul %25, %26, %cst_10 {dimension_numbers = #tpu.dot_dimension_numbers<[1], [0], [0], [1], [0, 0, 1, 1], [], []>} : vector<16x128xbf16>, vector<128x128xbf16>, vector<16x128xf32> -> vector<16x128xf32>
    %28 = vector.shape_cast %27 : vector<16x128xf32> to vector<2x8x128xf32>
    %c0_11 = arith.constant 0 : index
    %c0_12 = arith.constant 0 : index
    %29 = vector.load %arg4[%c0_11, %c0_12] : memref<8x128xf32, #tpu.memory_space<vmem>>, vector<8x128xf32>
    %c0_13 = arith.constant 0 : index
    %c0_14 = arith.constant 0 : index
    %30 = vector.load %arg5[%c0_13, %c0_14] : memref<1x128xf32, #tpu.memory_space<vmem>>, vector<1x128xf32>
    %31 = vector.broadcast %23 : vector<2x8x1xf32> to vector<2x8x128xf32>
    %32 = arith.mulf %28, %31 : vector<2x8x128xf32>
    %33 = vector.shape_cast %29 : vector<8x128xf32> to vector<1x8x128xf32>
    %34 = vector.broadcast %33 : vector<1x8x128xf32> to vector<2x8x128xf32>
    %35 = arith.mulf %0, %34 : vector<2x8x128xf32>
    %36 = vector.shape_cast %30 : vector<1x128xf32> to vector<1x1x128xf32>
    %37 = vector.broadcast %36 : vector<1x1x128xf32> to vector<2x8x128xf32>
    %38 = arith.addf %35, %37 : vector<2x8x128xf32>
    %39 = vector.broadcast %22 : vector<2x8x1xf32> to vector<2x8x128xf32>
    %40 = arith.mulf %38, %39 : vector<2x8x128xf32>
    %41 = arith.addf %32, %40 : vector<2x8x128xf32>
    %c0_15 = arith.constant 0 : index
    %c0_16 = arith.constant 0 : index
    %c0_17 = arith.constant 0 : index
    %42 = vector.load %arg6[%c0_15, %c0_16, %c0_17] : memref<2x8x128xf32, #tpu.memory_space<vmem>>, vector<2x8x128xf32>
    tpu.vector_store %arg6[%c0_15, %c0_16, %c0_17], %41 {strides = array<i32>} : memref<2x8x128xf32, #tpu.memory_space<vmem>>, vector<2x8x128xf32>,
    return
  }
  func.func @transform_0(%arg0: i32) -> (i32, i32, i32) {
    %c0_i32 = arith.constant 0 : i32
    %c0_i32_0 = arith.constant 0 : i32
    %c0_i32_1 = arith.constant 0 : i32
    return %arg0, %c0_i32, %c0_i32_0 : i32, i32, i32
  }
  func.func @transform_1(%arg0: i32) -> (i32, i32, i32) {
    %c0_i32 = arith.constant 0 : i32
    %c0_i32_0 = arith.constant 0 : i32
    %c0_i32_1 = arith.constant 0 : i32
    %c0_i32_2 = arith.constant 0 : i32
    return %c0_i32, %c0_i32_0, %c0_i32_1 : i32, i32, i32
  }
  func.func @transform_2(%arg0: i32) -> (i32, i32) {
    %c0_i32 = arith.constant 0 : i32
    %c0_i32_0 = arith.constant 0 : i32
    %c0_i32_1 = arith.constant 0 : i32
    return %c0_i32, %c0_i32_0 : i32, i32
  }
  func.func @transform_3(%arg0: i32) -> (i32, i32) {
    %c0_i32 = arith.constant 0 : i32
    %c0_i32_0 = arith.constant 0 : i32
    %c0_i32_1 = arith.constant 0 : i32
    return %c0_i32, %c0_i32_0 : i32, i32
  }
  func.func @transform_4(%arg0: i32) -> (i32, i32) {
    %c0_i32 = arith.constant 0 : i32
    %c0_i32_0 = arith.constant 0 : i32
    %c0_i32_1 = arith.constant 0 : i32
    return %c0_i32, %c0_i32_0 : i32, i32
  }
  func.func @transform_5(%arg0: i32) -> (i32, i32, i32) {
    %c0_i32 = arith.constant 0 : i32
    %c0_i32_0 = arith.constant 0 : i32
    %c0_i32_1 = arith.constant 0 : i32
    return %arg0, %c0_i32, %c0_i32_0 : i32, i32, i32
  }
}

</mosaic_0001>

<bundles_post_ra>
// kernel: tpu_custom_call.1
= control target key start
LH: loop header
LB: loop body
LE: loop exit
PB: predicated region body
PF: predicated region fallthrough
CT: control target
= control target key end

     0   :  { %10 = vsyncpa [#allocation3], 0  ;;  %s1149_s0 = inlined_call_operand.hbm [shape: f32[4,8,128], index: 0, kind: input, shape index: {}]   ;;  %s1150_s1 = inlined_call_operand.hbm [shape: f32[2,8,128], index: 1, kind: input, shape index: {}]   ;;  %s1151_s2 = inlined_call_operand.hbm [shape: bf16[128,128], index: 2, kind: input, shape index: {}]   ;;  %s1152_s3 = inlined_call_operand.vmem [shape: f32[8,128], index: 3, kind: input, shape index: {}]   ;;  %s1153_s4 = inlined_call_operand.vmem [shape: f32[1,128], index: 4, kind: input, shape index: {}]   ;;  %s1154_s5 = inlined_call_operand.hbm [shape: f32[4,8,128], index: 5, kind: output, shape index: {}]  }
   0x1   :  { %12 = vsyncpa [#allocation3 + $0x1], 0 }
   0x2   :  { %13 = vsyncpa [#allocation6], 0 }
   0x3   :  { %14 = vsyncpa [#allocation4], 0 }
   0x4   :  { %16 = vsyncpa [#allocation4 + $0x1], 0  ;;  %s899_s18 = smov 0   ;;  %s901_s19 = smov 0  }
   0x5   :  { %s903_s20 = smov 0   ;;  %s905_s21 = smov 0  }
   0x6 LB: > { %s920_s22 = sadd.s32 4294967295, %s855_s21   ;;  %s546_s23 = sadd.s32 4294967294, %s855_s21   ;;  %s855_s21 = sphi %s905_s21, %s1174_s21   ;;  %s851_s20 = sphi %s903_s20, %s1173_s20   ;;  %s847_s19 = sphi %s901_s19, %s1172_s19   ;;  %s843_s18 = sphi %s899_s18, %s1171_s18  }
   0x7   : > { %p42_p0 = scmp.ne.s32.totalorder %s847_s19, %s843_s18  ;;  %p1155_p1 = scmp.eq.s32.totalorder %s920_s22, 0 }
   0x8   : > { %p156_p3 = scmp.eq.s32.totalorder %s546_s23, 1  ;;  %p547_p5 = scmp.ge.s32.totalorder %s855_s21, 1 }
   0x9   : > { %p929_p4 = por %p1155_p1, %p42_p0  ;;  %p163_p7 = scmp.lt.s32.totalorder %s855_s21, 3 }
   0xa   : > { %p934_p6 = por %p156_p3, %p42_p0  ;;  %s857_s27 = smov [#allocation5]  }
   0xb   : > { %s1158_s24 = scalar_select %p929_p4, 1, 0 }
   0xc   : > { %s1159_s25 = scalar_select %p934_p6, 1, 0 }
   0xd   : > { %p939_p8 = pnand %p547_p5, %p163_p7  ;;  %s175_s28 = sshll.u32 %s857_s27, 4  ;;  %s943_s28 = int_to_ptr.vmem [resolvable:$true] %s175_s28 }
   0xe   : > { %s858_s30 = smov [#allocation7]   ;;  %s699_s9 = scalar_lea.hbm %s1150_s1, 256 }
   0xf   : > { %p616_p9 = pneg %p939_p8  ;;  %s188_s6 = sshll.u32 %s858_s30, 4  ;;  %s954_s6 = int_to_ptr.vmem [resolvable:$true] %s188_s6 }
  0x10   : > { %p700_p12 = scmp.ne.s32.totalorder %s1150_s1, %s699_s9  ;;  %p706_p5 = scmp.lt.u32.totalorder %s699_s9, %s1150_s1 }
  0x11   : > { %p950_p11 = pnand %p616_p9, %p1155_p1 }
  0x13   : > { %p701_p13 = pneg %p950_p11 }
  0x15   : > { %p702_p0 = pnand %p701_p13, %p700_p12 }
  0x17   : > { %p703_p3 = pneg %p702_p0 }
  0x19   : > { %p708_p7 = pnand %p706_p5, %p703_p3 }
  0x1b   : > { %711 = shalt.err (!%p708_p7)
}
  0x1c   : > { %s712_s14 = scalar_lea.vmem %s943_s28, 256  ;;  %p720_p2 = scmp.lt.s32.totalorder %s943_s28, %s943_s28 }
  0x1d   : > { %p713_p9 = scmp.ne.s32.totalorder %s943_s28, %s712_s14  ;;  %p721_p12 = scmp.lt.s32.totalorder %s712_s14, %s712_s14 }
  0x1f   : > { %p715_p10 = pnand %p713_p9, %p701_p13  ;;  %p722_p0 = por %p721_p12, %p720_p2 }
  0x21   : > { %p716_p1 = pneg %p715_p10 }
  0x23   : > { %p723_p6 = pnand %p722_p0, %p716_p1 }
  0x25   : > { %726 = shalt.err (!%p723_p6)
}
  0x26   : > { %s859_s15 = smov 128   ;;  %s860_s16 = smov 8  }
  0x27   : > { %619 = dma.hbm_to_vmem [thread:$0]  (!%p950_p11), %s1150_s1, 256, %s943_s28, [#allocation6], %s859_s15, %s859_s15, %s860_s16  }
  0x28   : > { %s727_s7 = scalar_lea.hbm %s1151_s2, 1024 }
  0x29   : > { %p728_p1 = scmp.ne.s32.totalorder %s1151_s2, %s727_s7  ;;  %p734_p10 = scmp.lt.u32.totalorder %s727_s7, %s1151_s2 }
  0x2b   : > { %p730_p2 = pnand %p728_p1, %p701_p13 }
  0x2d   : > { %p731_p6 = pneg %p730_p2 }
  0x2f   : > { %p736_p3 = pnand %p734_p10, %p731_p6 }
  0x31   : > { %739 = shalt.err (!%p736_p3)
}
  0x32   : > { %s740_s28 = scalar_lea.vmem %s954_s6, 1024  ;;  %p748_p12 = scmp.lt.s32.totalorder %s954_s6, %s954_s6 }
  0x33   : > { %p741_p5 = scmp.ne.s32.totalorder %s954_s6, %s740_s28  ;;  %p749_p0 = scmp.lt.s32.totalorder %s740_s28, %s740_s28 }
  0x35   : > { %p743_p7 = pnand %p741_p5, %p701_p13  ;;  %p750_p1 = por %p749_p0, %p748_p12 }
  0x37   : > { %p744_p9 = pneg %p743_p7 }
  0x39   : > { %p751_p2 = pnand %p750_p1, %p744_p9 }
  0x3b   : > { %754 = shalt.err (!%p751_p2)
}
  0x3c   : > { %s861_s12 = smov 64   ;;  %s862_s13 = smov 4  }
  0x3d   : > { %622 = dma.hbm_to_vmem [thread:$0]  (!%p950_p11), %s1151_s2, 1024, %s954_s6, [#allocation6], %s861_s12, %s861_s12, %s862_s13  }
  0x3e   : > { %s1012_s23 = sadd.s32 1, %s855_s21   ;;  %s29_s30 = sadd.s32 1, %s851_s20 }
  0x3f   : > { %s26_s27 = ssub.s32 %s855_s21, %s1012_s23  ;;  %p36_p6 = scmp.ne.s32.totalorder %s851_s20, %s847_s19 }
  0x40   : > { %p27_p13 = scmp.eq.s32.totalorder %s26_s27, 0  ;;  %p37_p10 = scmp.eq.s32.totalorder %s855_s21, 0 }
  0x41   : > { %p1162_p5 = scmp.eq.s32.totalorder %s920_s22, 1  ;;  %p633_p9 = scmp.lt.s32.totalorder %s855_s21, 2 }
  0x42   : > { %s1021_s7 = scalar_select %p27_p13, %s851_s20, %s29_s30  }
  0x43   : > { %p38_p3 = por %p37_p10, %p36_p6  ;;  %p1025_p7 = por %p1162_p5, %p36_p6 }
  0x44   : > { %s208_s29 = sand.u32 1, %s851_s20   ;;  %s573_s6 = sshll.u32 %s855_s21, 8 }
  0x45   : > { %s1163_s8 = scalar_select %p1025_p7, 1, 0 }
  0x46   : > { %s551_s9 = sshll.u32 %s208_s29, 4  ;;  %s1035_s28 = scalar_lea.hbm %s1149_s0, %s573_s6 }
  0x47   : > { %s212_s12 = scalar_lea.vmem [#allocation2], %s551_s9  ;;  %p1039_p11 = pnand %p633_p9, %p38_p3 }
  0x48   : > { %s219_s13 = sshll.u32 %s212_s12, 4  ;;  %s1043_s17 = scalar_lea.sflag [#allocation3], %s208_s29  ;;  %s1037_s13 = int_to_ptr.vmem [resolvable:$true] %s219_s13 }
  0x49   : > { %s755_s27 = scalar_lea.hbm %s1035_s28, 256  ;;  %p757_p0 = pneg %p1039_p11 }
  0x4a   : > { %p756_p12 = scmp.ne.s32.totalorder %s1035_s28, %s755_s27  ;;  %s760_s6 = scalar_lea.hbm %s1149_s0, 512 }
  0x4b   : > { %p761_p13 = scmp.lt.u32.totalorder %s1035_s28, %s1149_s0  ;;  %p762_p6 = scmp.lt.u32.totalorder %s760_s6, %s755_s27 }
  0x4c   : > { %p758_p1 = pnand %p757_p0, %p756_p12  ;;  %p764_p3 = scmp.lt.u32.totalorder %s755_s27, %s1035_s28 }
  0x4d   : > { %p763_p10 = por %p762_p6, %p761_p13 }
  0x4e   : > { %p759_p2 = pneg %p758_p1 }
  0x4f   : > { %p765_p5 = por %p764_p3, %p763_p10 }
  0x51   : > { %p766_p9 = pnand %p765_p5, %p759_p2 }
  0x53   : > { %769 = shalt.err (!%p766_p9)
}
  0x54   : > { %s770_s29 = scalar_lea.vmem %s1037_s13, 256  ;;  %s863_s12 = smov [#allocation2]  }
  0x55   : > { %p771_p12 = scmp.ne.s32.totalorder %s1037_s13, %s770_s29  ;;  %s775_s30 = sshll.u32 %s863_s12, 4  ;;  %s776_s30 = int_to_ptr.vmem [resolvable:$false] %s775_s30 }
  0x56   : > { %s777_s9 = scalar_lea.vmem %s776_s30, 512  ;;  %p778_p4 = scmp.lt.s32.totalorder %s1037_s13, %s776_s30 }
  0x57   : > { %p773_p1 = pnand %p771_p12, %p757_p0  ;;  %p779_p13 = scmp.lt.s32.totalorder %s777_s9, %s770_s29 }
  0x59   : > { %p774_p7 = pneg %p773_p1  ;;  %p780_p6 = por %p779_p13, %p778_p4 }
  0x5b   : > { %p781_p10 = pnand %p780_p6, %p774_p7 }
  0x5d   : > { %784 = shalt.err (!%p781_p10)
}
  0x5e   : > { %626 = dma.hbm_to_vmem [thread:$0]  (!%p1039_p11), %s1035_s28, 256, %s1037_s13, %s1043_s17, %s859_s15, %s859_s15, %s860_s16  }
  0x5f   : > { %231 = sbr.rel (%p939_p8) target bundleno = 372 (0x174), region = 40  ;;  %s1077_s27 = sand.u32 (!%p939_p8), 1, %s847_s19  }
  0x60   : > { %s555_s6 = sshll.u32 (!%p939_p8), %s1077_s27, 4  ;;  %s234_s10 = scalar_lea.sflag (!%p939_p8), [#allocation3], %s1077_s27 }
  0x61   : > { %s237_s14 = scalar_lea.vmem (!%p939_p8), [#allocation2], %s555_s6  ;;  %p1165_p4 = scmp.ne.s32.totalorder (!%p939_p8), %s1158_s24, 0 }
  0x66   : > { %830 = dma.done.wait (%p1165_p4), %s234_s10, 256  }
  0x67   : > { %832 = vsyncadd (%p1165_p4), %s234_s10, 4294967040  ;;  %p1166_p7 = scmp.eq.s32.totalorder %s920_s22, 0 }
  0x69   : > { %834 = dma.done.wait (%p1166_p7), [#allocation6], 1280   ;;  %p1167_p8 = pmov %p1166_p7 }
  0x6a   : > { %v864_v0 = vmov 0.0   ;;  %vm865_vm0 = vmmov 0   ;;  %v679_v1 = vld [vmem:[#allocation7] sm:$0xff]   ;;  %v680_v2 = vld [vmem:[#allocation7 + $0x8] sm:$0xff]   ;;  %v681_v3 = vld [vmem:[#allocation7 + $0x10] sm:$0xff]   ;;  %s271_s28 = scalar_lea.vmem [#allocation8], %s555_s6 }
  0x6b   : > { %836 = vsyncadd (%p1167_p8), [#allocation6], 4294966016  ;;  %584 = vmatprep.subr.bf16.mxu0 %v864_v0  ;;  %600 = vmatprep.mubr.msk.bf16.mxu0 %vm865_vm0, %v864_v0  ;;  %v275_v4 = vld [vmem:[%s237_s14] sm:$0xff]  ;;  %v279_v5 = vld [vmem:[#allocation5 + $0x8] sm:$0xff]  ;;  %s454_s13 = sshll.u32 %s271_s28, 4  ;;  %s574_s17 = sshll.u32 %s920_s22, 8  ;;  %s1100_s13 = int_to_ptr.vmem [resolvable:$true] %s454_s13 }
  0x6c   : > { %585 = vmatpush3.bf16.msra.mxu0 %v679_v1  ;;  %v286_v6 = vmul.f32 %v279_v5, %v275_v4  ;;  %v277_v7 = vld [vmem:[#allocation5] sm:$0xff]  ;;  %v682_v8 = vld [vmem:[#allocation7 + $0x18] sm:$0xff]   ;;  %v683_v13 = vld [vmem:[#allocation7 + $0x20] sm:$0xff]   ;;  %s1105_s12 = scalar_lea.hbm %s1154_s5, %s574_s17  ;;  %s441_s30 = scalar_lea.sflag [#allocation4], %s1077_s27 }
  0x6d   : > { %586 = vmatprep.subr.bf16.mxu0 %v864_v0  ;;  %v276_v9 = vld [vmem:[%s237_s14 + $0x8] sm:$0xff]  ;;  %v280_v10 = vmul.f32 %v277_v7, %v275_v4  ;;  %v685_v15 = vld [vmem:[#allocation7 + $0x30] sm:$0xff]   ;;  %s785_s22 = scalar_lea.vmem %s1100_s13, 256  ;;  %p1168_p0 = scmp.ne.s32.totalorder %s1163_s8, 0 }
  0x6e   : > { %288 = vadd.xlane.f32.xlu1 %v286_v6  ;;  %v287_v11 = vmul.f32 %v279_v5, %v276_v9  ;;  %v281_v12 = vmul.f32 %v277_v7, %v276_v9  ;;  %v684_v14 = vld [vmem:[#allocation7 + $0x28] sm:$0xff]   ;;  %v686_v16 = vld [vmem:[#allocation7 + $0x38] sm:$0xff]   ;;  %v314_v17 = vpack.c.bf16 %v276_v9, %v275_v4  ;;  %v420_v38 = vld [vmem:[%s1152_s3] sm:$0xff]  ;;  %p786_p11 = scmp.ne.s32.totalorder %s1100_s13, %s785_s22  ;;  %s866_s9 = smov [#allocation8]  }
  0x6f   : > { %282 = vadd.xlane.f32.xlu0 %v280_v10  ;;  %v424_v39 = vmul.f32 %v420_v38, %v275_v4  ;;  %v567_v41 = vld [vmem:[%s1153_s4] ss:$0 sm:$0xff]  ;;  %v425_v42 = vmul.f32 %v420_v38, %v276_v9  ;;  %s789_s6 = sshll.u32 %s866_s9, 4  ;;  %s790_s6 = int_to_ptr.vmem [resolvable:$false] %s789_s6 }
  0x70   : > { %587 = vmatpush3.bf16.msra.mxu0 %v680_v2  ;;  %p787_p2 = pnand %p786_p11, %p1168_p0  ;;  %s791_s10 = scalar_lea.vmem %s790_s6, 512 }
  0x71   : > { %588 = vmatprep.subr.bf16.mxu0 %v864_v0  ;;  %v432_v45 = vadd.f32 %v567_v41, %v424_v39  ;;  %v433_v48 = vadd.f32 %v567_v41, %v425_v42  ;;  %p792_p5 = scmp.lt.s32.totalorder %s1100_s13, %s790_s6  ;;  %p793_p9 = scmp.lt.s32.totalorder %s791_s10, %s785_s22 }
  0x72   : > { %290 = vadd.xlane.f32.xlu1 %v287_v11  ;;  %p788_p3 = pneg %p787_p2 }
  0x73   : > { %284 = vadd.xlane.f32.xlu0 %v281_v12  ;;  %p794_p12 = por %p793_p9, %p792_p5 }
  0x74   : > { %589 = vmatpush3.bf16.msra.mxu0 %v681_v3 }
  0x75   : > { %590 = vmatprep.subr.bf16.mxu0 %v864_v0  ;;  %p795_p1 = pnand %p794_p12, %p788_p3 }
  0x78   : > { %591 = vmatpush3.bf16.msra.mxu0 %v682_v8 }
  0x79   : > { %592 = vmatprep.subr.bf16.mxu0 %v864_v0 }
  0x7c   : > { %593 = vmatpush3.bf16.msra.mxu0 %v683_v13 }
  0x7d   : > { %594 = vmatprep.subr.bf16.mxu0 %v864_v0 }
  0x80   : > { %595 = vmatpush3.bf16.msra.mxu0 %v684_v14 }
  0x81   : > { %596 = vmatprep.subr.bf16.mxu0 %v864_v0 }
  0x84   : > { %597 = vmatpush3.bf16.msra.mxu0 %v685_v15 }
  0x85   : > { %598 = vmatprep.subr.bf16.mxu0 %v864_v0 }
  0x88   : > { %599 = vmatpush3.bf16.msra.mxu0 %v686_v16 }
  0x8b   : > { %601 = vmatmul.mubr.bf16.vlgmr.msra.gmra.mrb[0].mxu0 %v314_v17 }
  0xfb   : > { %v289_v18 = vpop.xlane.xlu1 %288 }
  0xfc   : > { %v283_v19 = vpop.xlane.xlu0 %282 }
  0xfd   : > { %v292_v22 = vmax.f32 %v283_v19, %v289_v18 }
  0xff   : > { %v291_v20 = vpop.xlane.xlu1 %290  ;;  %v294_v24 = vsub.f32 %v283_v19, %v292_v22  ;;  %v300_v25 = vsub.f32 %v289_v18, %v292_v22 }
 0x100   : > { %v285_v21 = vpop.xlane.xlu0 %284 }
 0x101   : > { %v293_v23 = vmax.f32 %v285_v21, %v291_v20  ;;  %v296_v28 = vmul.f32 1.442695, %v294_v24  ;;  %v302_v29 = vmul.f32 1.442695, %v300_v25 }
 0x103   : > { %v295_v26 = vsub.f32 %v285_v21, %v293_v23  ;;  %v301_v27 = vsub.f32 %v291_v20, %v293_v23  ;;  %687 = vpow2.f32 %v296_v28 }
 0x104   : > { %689 = vpow2.f32 %v302_v29 }
 0x105   : > { %v298_v30 = vmul.f32 1.442695, %v295_v26  ;;  %v304_v31 = vmul.f32 1.442695, %v301_v27 }
 0x107   : > { %691 = vpow2.f32 %v298_v30 }
 0x108   : > { %693 = vpow2.f32 %v304_v31 }
 0x10d   : > { %v688_v32 = vpop.eup %687 }
 0x10e   : > { %v690_v33 = vpop.eup %689 }
 0x10f   : > { %v306_v36 = vadd.f32 %v690_v33, %v688_v32 }
 0x111   : > { %v692_v34 = vpop.eup %691  ;;  %695 = vrcp.f32 %v306_v36 }
 0x112   : > { %v694_v35 = vpop.eup %693 }
 0x113   : > { %v307_v37 = vadd.f32 %v694_v35, %v692_v34 }
 0x115   : > { %697 = vrcp.f32 %v307_v37 }
 0x11b   : > { %v696_v40 = vpop.eup %695 }
 0x11c   : > { %v310_v44 = vmul.f32 %v696_v40, %v688_v32  ;;  %v312_v46 = vmul.f32 %v696_v40, %v690_v33 }
 0x11e   : > { %v434_v51 = vmul.f32 %v432_v45, %v310_v44 }
 0x11f   : > { %v698_v43 = vpop.eup %697 }
 0x120   : > { %v311_v47 = vmul.f32 %v698_v43, %v692_v34  ;;  %v313_v53 = vmul.f32 %v698_v43, %v694_v35 }
 0x122   : > { %v435_v57 = vmul.f32 %v433_v48, %v311_v47 }
 0x15e   : > { %v413_v49 = vpop.f32.mrb[0].mxu0 }
 0x15f   : > { %v422_v50 = vmul.f32 %v413_v49, %v312_v46  ;;  %v602_v52 = vpop.f32.mrb[1].mxu0 }
 0x160   : > { %v416_v54 = vpop.f32.mrb[2].mxu0 }
 0x161   : > { %v436_v55 = vadd.f32 %v434_v51, %v422_v50  ;;  %v423_v56 = vmul.f32 %v416_v54, %v313_v53  ;;  %v603_v58 = vpop.f32.mrb[3].mxu0 }
 0x163   : > { %438 = vst [vmem:[%s271_s28] sm:$0xff] %v436_v55  ;;  %v437_v59 = vadd.f32 %v435_v57, %v423_v56 }
 0x165   : > { %439 = vst [vmem:[%s271_s28 + $0x8] sm:$0xff] %v437_v59 }
 0x166   : > { %798 = shalt.err (!%p795_p1)
}
 0x167   : > { %s799_s14 = scalar_lea.hbm %s1105_s12, 256  ;;  %s803_s15 = scalar_lea.hbm %s1154_s5, 512 }
 0x168   : > { %p800_p13 = scmp.ne.s32.totalorder %s1105_s12, %s799_s14  ;;  %p804_p4 = scmp.lt.u32.totalorder %s1105_s12, %s1154_s5 }
 0x169   : > { %p805_p7 = scmp.lt.u32.totalorder %s803_s15, %s799_s14  ;;  %p807_p11 = scmp.lt.u32.totalorder %s799_s14, %s1105_s12 }
 0x16a   : > { %p801_p6 = pnand %p800_p13, %p1168_p0 }
 0x16b   : > { %p806_p8 = por %p805_p7, %p804_p4 }
 0x16c   : > { %p802_p10 = pneg %p801_p6 }
 0x16d   : > { %p808_p2 = por %p807_p11, %p806_p8 }
 0x16f   : > { %p809_p3 = pnand %p808_p2, %p802_p10 }
 0x171   : > { %812 = shalt.err (!%p809_p3)
}
 0x172   : > { %s867_s17 = smov 128   ;;  %s868_s11 = smov 8  }
 0x173   : > { %614 = dma.vmem_to_hbm [thread:$0]  (%p1168_p0), %s1100_s13, 256, %s1105_s12, %s441_s30, %s867_s17, %s867_s17, %s868_s11  }
 0x174 PF: > { %s469_s29 = sand.u32 1, %s843_s18   ;;  %p1169_p5 = scmp.ne.s32.totalorder %s1159_s25, 0 }
 0x175   : > { %p1170_p9 = scmp.ge.s32.totalorder %s855_s21, 2  ;;  %s470_s22 = scalar_lea.sflag [#allocation4], %s469_s29 }
 0x177   : > { %p628_p12 = pnand %p1170_p9, %p1169_p5 }
 0x179   : > { %838 = dma.done.wait (!%p628_p12), %s470_s22, 256  }
 0x17a   : > { %840 = vsyncadd (!%p628_p12), %s470_s22, 4294967040  ;;  %p19_p1 = scmp.ge.s32.totalorder %s1012_s23, 4   ;;  %s1171_s18 = smov %s847_s19 }
 0x17b   : > { %s1172_s19 = smov %s851_s20  ;;  %s1173_s20 = smov %s1021_s7 }
 0x17c   : > { %s1174_s21 = smov %s1012_s23  ;;  %21 = sbr.rel (!%p19_p1) target bundleno = 6 (0x6), region = 94 }
 0x183   :  { %475 = vsyncpa [#allocation3], 1 }
 0x184   :  { %477 = vsyncpa [#allocation3 + $0x1], 1 }
 0x185   :  { %478 = vsyncpa [#allocation6], 1 }
 0x186   :  { %479 = vsyncpa [#allocation4], 1 }
 0x187   :  { %481 = vsyncpa [#allocation4 + $0x1], 1 }

</bundles_post_ra>
